<compile_context>
chip_gen: v6e
topology: v6e:2x2x1
jax: 0.10.0
libtpu: 0.0.40
codegen_flags: <defaults>
</compile_context>

<pallas_src>
import functools
import math

import jax
import jax.numpy as jnp
import numpy as np
from jax.experimental import pallas as pl
from jax.experimental.pallas import tpu as pltpu


def _cdiv(a, b):
    return -(-a // b)


def _round_up(x, m):
    return ((x + m - 1) // m) * m


# Budget for the streamed (double-buffered) tiles; conservative for v7x
# (64 MiB physical VMEM), comfortable on v5e/v6e (128 MiB).
_STREAM_VMEM_BUDGET = 28 * 1024 * 1024
_VMEM_LIMIT_BYTES = 48 * 1024 * 1024


def _scorers_kernel(emb_ref, w_ref, bias_ref, mask_ref, prob_ref):
    # emb_ref:  (TB, K)  streamed batch tile (f32 or bf16)
    # w_ref:    (K, N)   resident block-diagonal weights (bf16)
    # bias_ref: (1, N)   resident (f32)
    # mask_ref: (TB, N)  streamed (f32)
    # prob_ref: (TB, N)  output (f32)
    emb = emb_ref[...]
    if emb.dtype != w_ref.dtype:
        emb = emb.astype(w_ref.dtype)          # bf16 MXU operands (VPU cast, cheap)
    logits = jnp.dot(emb, w_ref[...], preferred_element_type=jnp.float32)
    logits = logits + bias_ref[...]
    prob_ref[...] = jax.nn.sigmoid(logits) * mask_ref[...]


def _pick_tile_rows(n_rows, bytes_per_row):
    """Largest sublane-aligned row tile fitting the double-buffered budget,
    with >=2 grid blocks whenever the batch is non-tiny (DMA/compute overlap
    everywhere; megacore sharding on v7x)."""
    if n_rows <= 8:
        return n_rows                                     # full-extent block
    rows_fit = max(8, _STREAM_VMEM_BUDGET // (2 * bytes_per_row))
    n_blocks = max(2, _cdiv(n_rows, rows_fit))
    tb = _round_up(_cdiv(n_rows, n_blocks), 8)
    return min(tb, _round_up(n_rows, 8))


@jax.jit
def scorers_w_id_forward(embeddings, weights, bias, mask):
    """embeddings: (bs, num_node, em_dim) f32 or bf16
       weights:    (num_node, em_dim)     f32  (row i = scorers[i].weight)
       bias:       (num_node,)            f32  (bias[i] = scorers[i].bias)
       mask:       (bs, num_node)         numeric/bool
       returns (prob (bs, num_node) f32, prob_overall (bs,) f32).

       Note: sum(mask[b])==0 gives inf/nan in prob_overall[b] (matches the
       PyTorch reference).  The contraction uses bf16 MXU operands with f32
       accumulation, so pre-sigmoid values carry bf16-level (~1e-3) error."""
    bs, num_node, em_dim = embeddings.shape
    feat = num_node * em_dim
    mask = mask.astype(jnp.float32)
    mxu_dtype = jnp.bfloat16

    # Block-diagonal per-node weights: column j holds W[j, :] in rows
    # j*em_dim:(j+1)*em_dim, zeros elsewhere.  (Callers with static weights
    # may want to precompute/cache this outside the jitted call.)
    eye_n = jnp.eye(num_node, dtype=jnp.float32)
    w_bd = (weights.astype(jnp.float32)[:, :, None]
            * eye_n[:, None, :]).reshape(feat, num_node)

    # Lane packing: fold `pack` batch rows into one kernel row so the
    # logits/mask/prob width is a multiple of 128 lanes.
    pack = 128 // math.gcd(num_node, 128)
    use_packed = (pack > 1) and (bs % pack == 0) and (bs >= pack)
    if use_packed:
        n_rows = bs // pack
        k_dim = pack * feat
        n_cols = pack * num_node                       # multiple of 128
        emb_in = embeddings.reshape(n_rows, k_dim)     # contiguous reshape (free)
        mask_in = mask.reshape(n_rows, n_cols)         # contiguous reshape (free)
        w_mx = jnp.kron(jnp.eye(pack, dtype=jnp.float32), w_bd).astype(mxu_dtype)
        bias_in = jnp.tile(bias.astype(jnp.float32), pack).reshape(1, n_cols)
    else:
        n_rows = bs
        k_dim = feat
        n_cols = num_node
        emb_in = embeddings.reshape(n_rows, k_dim)
        mask_in = mask
        w_mx = w_bd.astype(mxu_dtype)
        bias_in = bias.astype(jnp.float32).reshape(1, n_cols)

    # Padding-aware VMEM accounting: narrow mask/prob tiles lane-pad to 128.
    padded_cols = _round_up(n_cols, 128)
    bytes_per_row = k_dim * emb_in.dtype.itemsize + 2 * padded_cols * 4
    tb = _pick_tile_rows(n_rows, bytes_per_row)
    grid = (_cdiv(n_rows, tb),)

    cost = pl.CostEstimate(
        flops=2 * n_rows * k_dim * n_cols,
        transcendentals=n_rows * n_cols,
        bytes_accessed=(emb_in.size * emb_in.dtype.itemsize
                        + 2 * n_rows * n_cols * 4
                        + k_dim * n_cols * w_mx.dtype.itemsize
                        + n_cols * 4),
    )

    prob_flat = pl.pallas_call(
        _scorers_kernel,
        out_shape=jax.ShapeDtypeStruct((n_rows, n_cols), jnp.float32),
        grid=grid,
        in_specs=[
            pl.BlockSpec((tb, k_dim), lambda i: (i, 0)),       # embeddings: streamed
            pl.BlockSpec((k_dim, n_cols), lambda i: (0, 0)),   # weights: resident
            pl.BlockSpec((1, n_cols), lambda i: (0, 0)),       # bias: resident
            pl.BlockSpec((tb, n_cols), lambda i: (i, 0)),      # mask: streamed
        ],
        out_specs=pl.BlockSpec((tb, n_cols), lambda i: (i, 0)),
        compiler_params=pltpu.CompilerParams(
            dimension_semantics=("parallel",),
            vmem_limit_bytes=_VMEM_LIMIT_BYTES,
        ),
        cost_estimate=cost,
    )(emb_in, w_mx, bias_in, mask_in)

    prob = prob_flat.reshape(bs, num_node)
    prob_overall = jnp.sum(prob, axis=1) / jnp.sum(mask, axis=1)
    return prob, prob_overall


def _reference(embeddings, weights, bias, mask):
    emb = embeddings.astype(jnp.float32)
    logits = jnp.einsum("bnd,nd->bn", emb, weights.astype(jnp.float32)) + bias[None, :]
    prob = jax.nn.sigmoid(logits) * mask
    overall = prob.sum(axis=1) / mask.sum(axis=1)
    return prob, overall


def _run_case(key, bs, num_node, em_dim, emb_dtype):
    k_emb, k_w, k_b, k_m = jax.random.split(key, 4)
    embeddings = jax.random.normal(k_emb, (bs, num_node, em_dim),
                                   dtype=jnp.float32).astype(emb_dtype)
    # Synthetic per-node nn.Linear(em_dim, 1) parameters.
    weights = jax.random.normal(k_w, (num_node, em_dim), dtype=jnp.float32) * 0.1
    bias = jax.random.normal(k_b, (num_node,), dtype=jnp.float32) * 0.1
    # Binary mask with every row non-empty (same implicit assumption as the
    # PyTorch code — all-zero rows give inf/nan in prob_overall).
    mask = (jax.random.uniform(k_m, (bs, num_node)) > 0.3).astype(jnp.float32)
    mask = mask.at[:, 0].set(1.0)

    prob, prob_overall = scorers_w_id_forward(embeddings, weights, bias, mask)
    jax.block_until_ready((prob, prob_overall))

    ref_prob, ref_overall = _reference(embeddings, weights, bias, mask)
    # bf16 MXU operands (f32 accumulate) -> loosened tolerance vs. f32 ref.
    np.testing.assert_allclose(np.asarray(prob), np.asarray(ref_prob),
                               rtol=2e-2, atol=2e-2)
    np.testing.assert_allclose(np.asarray(prob_overall), np.asarray(ref_overall),
                               rtol=2e-2, atol=2e-2)


if __name__ == "__main__":
    key = jax.random.PRNGKey(0)
    k0, k1, k2 = jax.random.split(key, 3)

    # Small shapes consistent with the module: bs=2, num_node=8, em_dim=32
    # (fallback layout, single full-extent block).
    _run_case(k0, bs=2, num_node=8, em_dim=32, emb_dtype=jnp.float32)

    # Larger batch, bs not a multiple of the lane-pack factor: fallback layout,
    # multi-block pipelined grid with a partial last block.
    _run_case(k1, bs=1000, num_node=8, em_dim=32, emb_dtype=jnp.float32)

    # Lane-packed layout with a bf16 embedding stream (halved HBM traffic),
    # >=2 grid blocks for megacore/pipelining.
    _run_case(k2, bs=1024, num_node=8, em_dim=32, emb_dtype=jnp.bfloat16)

    print("KERNEL_OK")
</pallas_src>

<mosaic_0001>
module attributes {stable_mosaic.version = 11 : i64} {
  func.func @_scorers_kernel(%arg0: i32, %arg1: memref<2x256xf32, #tpu.memory_space<vmem>>, %arg2: memref<256x8xbf16, #tpu.memory_space<vmem>>, %arg3: memref<1x8xf32, #tpu.memory_space<vmem>>, %arg4: memref<2x8xf32, #tpu.memory_space<vmem>>, %arg5: memref<2x8xf32, #tpu.memory_space<vmem>>) attributes {dimension_semantics = [#tpu.dimension_semantics<parallel>], iteration_bounds = array<i64: 1>, scalar_prefetch = 0 : i64, scratch_operands = 0 : i64, tpu.core_type = #tpu.core_type<tc>, window_params = [{transform_indices = @transform_0, window_bounds = array<i64: 2, 256>}, {pipeline_mode = #tpu.pipeline_mode<synchronous>, transform_indices = @transform_1, window_bounds = array<i64: 256, 8>}, {pipeline_mode = #tpu.pipeline_mode<synchronous>, transform_indices = @transform_2, window_bounds = array<i64: 1, 8>}, {transform_indices = @transform_3, window_bounds = array<i64: 2, 8>}, {transform_indices = @transform_4, window_bounds = array<i64: 2, 8>}]} {
    %c0 = arith.constant 0 : index
    %c0_0 = arith.constant 0 : index
    %0 = vector.load %arg1[%c0, %c0_0] : memref<2x256xf32, #tpu.memory_space<vmem>>, vector<2x256xf32>
    %1 = arith.truncf %0 : vector<2x256xf32> to vector<2x256xbf16>
    %c0_1 = arith.constant 0 : index
    %c0_2 = arith.constant 0 : index
    %2 = vector.load %arg2[%c0_1, %c0_2] : memref<256x8xbf16, #tpu.memory_space<vmem>>, vector<256x8xbf16>
    %cst = arith.constant dense<0.000000e+00> : vector<2x8xf32>
    %3 = tpu.matmul %1, %2, %cst {dimension_numbers = #tpu.dot_dimension_numbers<[1], [0], [0], [1], [0, 0, 1, 1], [], []>} : vector<2x256xbf16>, vector<256x8xbf16>, vector<2x8xf32> -> vector<2x8xf32>
    %c0_3 = arith.constant 0 : index
    %c0_4 = arith.constant 0 : index
    %4 = vector.load %arg3[%c0_3, %c0_4] : memref<1x8xf32, #tpu.memory_space<vmem>>, vector<1x8xf32>
    %5 = vector.broadcast %4 : vector<1x8xf32> to vector<2x8xf32>
    %6 = arith.addf %3, %5 : vector<2x8xf32>
    %7 = arith.negf %6 : vector<2x8xf32>
    %8 = math.exp %7 : vector<2x8xf32>
    %cst_5 = arith.constant 1.000000e+00 : f32
    %9 = vector.broadcast %cst_5 : f32 to vector<2x8xf32>
    %10 = arith.addf %9, %8 : vector<2x8xf32>
    %11 = arith.divf %9, %10 : vector<2x8xf32>
    %c0_6 = arith.constant 0 : index
    %c0_7 = arith.constant 0 : index
    %12 = vector.load %arg4[%c0_6, %c0_7] : memref<2x8xf32, #tpu.memory_space<vmem>>, vector<2x8xf32>
    %13 = arith.mulf %11, %12 : vector<2x8xf32>
    %c0_8 = arith.constant 0 : index
    %c0_9 = arith.constant 0 : index
    %14 = vector.load %arg5[%c0_8, %c0_9] : memref<2x8xf32, #tpu.memory_space<vmem>>, vector<2x8xf32>
    tpu.vector_store %arg5[%c0_8, %c0_9], %13 {strides = array<i32>} : memref<2x8xf32, #tpu.memory_space<vmem>>, vector<2x8xf32>,
    return
  }
  func.func @transform_0(%arg0: i32) -> (i32, i32) {
    %c0_i32 = arith.constant 0 : i32
    %c0_i32_0 = arith.constant 0 : i32
    return %arg0, %c0_i32 : i32, i32
  }
  func.func @transform_1(%arg0: i32) -> (i32, i32) {
    %c0_i32 = arith.constant 0 : i32
    %c0_i32_0 = arith.constant 0 : i32
    %c0_i32_1 = arith.constant 0 : i32
    return %c0_i32, %c0_i32_0 : i32, i32
  }
  func.func @transform_2(%arg0: i32) -> (i32, i32) {
    %c0_i32 = arith.constant 0 : i32
    %c0_i32_0 = arith.constant 0 : i32
    %c0_i32_1 = arith.constant 0 : i32
    return %c0_i32, %c0_i32_0 : i32, i32
  }
  func.func @transform_3(%arg0: i32) -> (i32, i32) {
    %c0_i32 = arith.constant 0 : i32
    %c0_i32_0 = arith.constant 0 : i32
    return %arg0, %c0_i32 : i32, i32
  }
  func.func @transform_4(%arg0: i32) -> (i32, i32) {
    %c0_i32 = arith.constant 0 : i32
    %c0_i32_0 = arith.constant 0 : i32
    return %arg0, %c0_i32 : i32, i32
  }
}

</mosaic_0001>

<bundles_post_ra>
// kernel: div.1
= control target key start
LH: loop header
LB: loop body
LE: loop exit
PB: predicated region body
PF: predicated region fallthrough
CT: control target
= control target key end

     0   :  { %3 = vsyncpa [#allocation1], 0  ;;  %s72_s0 = inlined_call_operand.vmem [shape: f32[2], index: 0, kind: input, shape index: {}]   ;;  %s73_s1 = inlined_call_operand.vmem [shape: f32[2], index: 1, kind: input, shape index: {}]   ;;  %s74_s2 = inlined_call_operand.hbm [shape: f32[2], index: 2, kind: output, shape index: {}]  }
   0x1   :  { %v5_v0 = vld [vmem:[%s73_s1] sm:$0x1] }
   0x2   :  { %23 = vrcp.f32 %v5_v0  ;;  %v4_v1 = vld [vmem:[%s72_s0] sm:$0x1]  ;;  %s47_s0 = smov [#allocation0]  }
   0x3   :  { %s16_s12 = sshll.u32 %s47_s0, 4  ;;  %s17_s12 = int_to_ptr.vmem [resolvable:$true] %s16_s12 }
   0x4   :  { %s25_s13 = scalar_lea.vmem %s17_s12, 16  ;;  %s29_s14 = scalar_lea.vmem %s17_s12, 32 }
   0x5   :  { %p26_p0 = scmp.ne.s32.totalorder %s17_s12, %s25_s13  ;;  %p30_p1 = scmp.lt.s32.totalorder %s17_s12, %s17_s12 }
   0x6   :  { %p31_p2 = scmp.lt.s32.totalorder %s29_s14, %s25_s13 }
   0x8   :  { %p32_p3 = por %p31_p2, %p30_p1 }
   0xa   :  { %p33_p4 = pnand %p32_p3, %p26_p0 }
   0xf   :  { %v24_v2 = vpop.eup %23 }
  0x10   :  { %v9_v3 = vmul.f32 %v24_v2, %v4_v1 }
  0x12   :  { %11 = vst [vmem:[#allocation0] sm:$0x1] %v9_v3 }
  0x13   :  { %36 = shalt.err (!%p33_p4)
}
  0x14   :  { %19 = dma.vmem_to_hbm [thread:$0]  %s17_s12, 16, %s74_s2, [#allocation1]  }
  0x15   :  { %45 = dma.done.wait [#allocation1], 16  }
  0x16   :  { %46 = vsyncadd [#allocation1], 4294967280 }
  0x17   :  { %21 = vsyncpa [#allocation1], 1 }

// kernel: scorers_w_id_forward.1
= control target key start
LH: loop header
LB: loop body
LE: loop exit
PB: predicated region body
PF: predicated region fallthrough
CT: control target
= control target key end

     0   :  { %vm215_vm0 = vcmask 58368   ;;  %s367_s1 = inlined_call_operand.vmem [shape: bf16[256,8], index: 1, kind: input, shape index: {}]   ;;  %s368_s0 = inlined_call_operand.vmem [shape: f32[2,256], index: 0, kind: input, shape index: {}]   ;;  %s369_s2 = inlined_call_operand.vmem [shape: f32[1,8], index: 2, kind: input, shape index: {}]   ;;  %s370_s3 = inlined_call_operand.vmem [shape: f32[2,8], index: 3, kind: input, shape index: {}]   ;;  %s371_s4 = inlined_call_operand.vmem [shape: f32[2,8], index: 4, kind: output, shape index: {}]  }
   0x1   :  { %v262_v0 = vld [vmem:[%s367_s1 + $0x78] sm:$0xff]   ;;  %v264_v2 = vld [vmem:[%s367_s1 + $0x70] sm:$0xff]   ;;  %v266_v4 = vld [vmem:[%s367_s1 + $0x68] sm:$0xff]  }
   0x2   :  { %v263_v1 = vld [vmem:[%s367_s1 + $0x38] sm:$0xff]   ;;  %240 = vmatprep.subr.bf16.mxu0 %v262_v0  ;;  %v265_v3 = vld [vmem:[%s367_s1 + $0x30] sm:$0xff]   ;;  %v267_v5 = vld [vmem:[%s367_s1 + $0x28] sm:$0xff]  }
   0x3   :  { %241 = vmatpush3.bf16.msra.mxu0 %v263_v1  ;;  %v268_v6 = vld [vmem:[%s367_s1 + $0x60] sm:$0xff]   ;;  %v270_v8 = vld [vmem:[%s367_s1 + $0x58] sm:$0xff]   ;;  %v272_v10 = vld [vmem:[%s367_s1 + $0x50] sm:$0xff]  }
   0x4   :  { %242 = vmatprep.subr.bf16.mxu0 %v264_v2  ;;  %v269_v7 = vld [vmem:[%s367_s1 + $0x20] sm:$0xff]   ;;  %v271_v9 = vld [vmem:[%s367_s1 + $0x18] sm:$0xff]   ;;  %v273_v13 = vld [vmem:[%s367_s1 + $0x10] sm:$0xff]  }
   0x5   :  { %v221_v11 = vld.sshfl [vmem:[%s368_s0] sm:$0x33 pattern:$0x76325410]  ;;  %v274_v15 = vld [vmem:[%s367_s1 + $0x48] sm:$0xff]  }
   0x6   :  { %v27_v12 = vcombine.high %v221_v11, %v221_v11  ;;  %v275_v16 = vld [vmem:[%s367_s1 + $0x8] sm:$0xff]   ;;  %v276_v17 = vld [vmem:[%s367_s1 + $0x40] sm:$0xff]   ;;  %v30_v19 = vpack.c.bf16 %v221_v11, %v221_v11 }
   0x7   :  { %243 = vmatpush3.bf16.msra.mxu0 %v265_v3  ;;  %v277_v18 = vld [vmem:[%s367_s1] sm:$0xff]  }
   0x8   :  { %244 = vmatprep.subr.bf16.mxu0 %v266_v4  ;;  %v31_v14 = vpack.c.bf16 %v27_v12, %v27_v12  ;;  %v222_v21 = vld [vmem:[%s369_s2] ss:$0 sm:$0xff] }
   0x9   :  { %v213_v30 = vld [vmem:[%s370_s3] sm:$0x3] }
   0xa   :  { %199 = vmatprep.mubr.bf16.mxu0 %v31_v14 }
   0xb   :  { %245 = vmatpush3.bf16.msra.mxu0 %v267_v5 }
   0xc   :  { %246 = vmatprep.subr.bf16.mxu0 %v268_v6 }
   0xf   :  { %247 = vmatpush3.bf16.msra.mxu0 %v269_v7 }
  0x10   :  { %248 = vmatprep.subr.bf16.mxu0 %v270_v8 }
  0x13   :  { %249 = vmatpush3.bf16.msra.mxu0 %v271_v9 }
  0x14   :  { %250 = vmatprep.subr.bf16.mxu0 %v272_v10 }
  0x17   :  { %251 = vmatpush3.bf16.msra.mxu0 %v273_v13 }
  0x18   :  { %252 = vmatprep.subr.bf16.mxu0 %v274_v15 }
  0x1b   :  { %253 = vmatpush3.bf16.msra.mxu0 %v275_v16 }
  0x1c   :  { %254 = vmatprep.subr.bf16.mxu0 %v276_v17 }
  0x1f   :  { %255 = vmatpush3.bf16.msra.mxu0 %v277_v18 }
  0x22   :  { %200 = vmatmul.mubr.bf16.vlgmr.msra.gmra.mxu0 %v30_v19 }
  0xe2   :  { %v256_v20 = vpop.f32.mrf.mxu0 }
  0xe4   :  { %v257_v22 = vpop.f32.mrf.mxu0 }
  0xe5   :  { %v258_v23 = vadd.f32 %v257_v22, %v256_v20 }
  0xe6   :  { %v259_v24 = vpop.f32.mrf.mxu0 }
  0xe7   :  { %v202_v25 = vadd.f32 %v258_v23, %v222_v21 }
  0xe8   :  { %v260_v26 = vpop.f32.mrf.mxu0 }
  0xe9   :  { %v239_v27 = vmul.f32 -1.442695, %v202_v25 }
  0xeb   :  { %278 = vpow2.f32 %v239_v27 }
  0xf8   :  { %v279_v28 = vpop.eup %278 }
  0xf9   :  { %v210_v29 = vadd.f32 1.0, %v279_v28 }
  0xfb   :  { %280 = vrcp.f32 %v210_v29 }
 0x108   :  { %v281_v31 = vpop.eup %280 }
 0x109   :  { %v214_v32 = vmul.f32 %v281_v31, %v213_v30 }
 0x10b   :  { %216 = vst.msk [vmem:[%s371_s4] sm:$0x3] %vm215_vm0, %v214_v32 }

</bundles_post_ra>
